<compile_context>
chip_gen: v6e
topology: v6e:2x2x1
jax: 0.10.0
libtpu: 0.0.40
codegen_flags: <defaults>
</compile_context>

<pallas_src>
import functools

import jax
import jax.numpy as jnp
from jax import lax
from jax.experimental import pallas as pl
from jax.experimental.pallas import tpu as pltpu


NEG_SLOPE = 0.2
MAX_TILE_M = 4096            # upper bound on rows per grid step
MIN_SPLIT_ROWS = 512         # split into >=2 grid steps above this (v7x: 2 TCs)
ROW_ALIGN = 16               # bf16 sublane pack (also valid for f32)
VMEM_LIMIT_BYTES = 32 * 1024 * 1024   # <= v7x scoped ceiling; < physical everywhere
VMEM_TILE_BUDGET = 20 * 1024 * 1024   # sizing budget (headroom for weights/scratch)


def _leaky_relu(x, negative_slope):
    return jnp.where(x >= 0, x, negative_slope * x)


def _round_up(x, n):
    return ((x + n - 1) // n) * n


def _lane_pad(d):
    return max(_round_up(d, 128), 128)


def _vmem_tile_cap(pac_dim, h1_dim, h2_dim):
    """Largest tile_m whose per-step VMEM footprint fits the sizing budget."""
    # Per-row bytes: f32 x tile (double-buffered) + in-kernel bf16 copy of x
    # + h1/h2 f32 and bf16 copies + double-buffered f32 output row.
    per_row = (
        (2 * 4 + 2) * _lane_pad(pac_dim)
        + 6 * (_lane_pad(h1_dim) + _lane_pad(h2_dim))
        + 8
    )
    cap = VMEM_TILE_BUDGET // per_row
    cap = max(256, (cap // 256) * 256)
    return min(MAX_TILE_M, cap)


def _choose_tile_m(m, pac_dim, h1_dim, h2_dim):
    """Rows per grid step: VMEM-capped, >=2 tiles for mid/large batches (v7x)."""
    cap = _vmem_tile_cap(pac_dim, h1_dim, h2_dim)
    if m > cap:
        return cap
    if m >= MIN_SPLIT_ROWS:
        # Fits in one tile, but split in two so both v7x TensorCores get work.
        return _round_up((m + 1) // 2, ROW_ALIGN)
    return _round_up(m, ROW_ALIGN)


def packed_discriminator_kernel(
    x_ref, w1_ref, b1_ref, w2_ref, b2_ref, w3_ref, b3_ref, out_ref,
    *, matmul_dtype, activation_dtype
):
    """One TILE_M-row slice of the packed discriminator MLP.

    x_ref:  [TILE_M, pac_dim] f32 packed inputs (cast to matmul_dtype here)
    w1_ref: [pac_dim, H1] matmul_dtype     b1_ref: [1, H1] f32
    w2_ref: [H1, H2]      matmul_dtype     b2_ref: [1, H2] f32
    w3_ref: [1, H2]       matmul_dtype     b3_ref: [1, 1]  f32
    out_ref:[1, TILE_M]   f32 sigmoid outputs (lane-dense)
    """
    # In-kernel cast: x traverses HBM once as f32; cast uses spare VPU slots.
    x = x_ref[...].astype(matmul_dtype)

    # Layer 1: Linear -> LeakyReLU -> (Dropout = identity at inference)
    h1 = jnp.dot(x, w1_ref[...], preferred_element_type=jnp.float32) + b1_ref[...]
    h1 = _leaky_relu(h1.astype(activation_dtype), NEG_SLOPE)

    # Layer 2: Linear -> LeakyReLU -> (Dropout = identity at inference)
    h2 = (
        jnp.dot(h1.astype(matmul_dtype), w2_ref[...], preferred_element_type=jnp.float32)
        + b2_ref[...]
    )
    h2 = _leaky_relu(h2.astype(activation_dtype), NEG_SLOPE)

    # Output layer (H2 -> 1) on the MXU, produced lane-dense:
    # logits[0, r] = sum_k w3[0, k] * h2[r, k]   (contraction on last dims).
    logits = lax.dot_general(
        w3_ref[...], h2.astype(matmul_dtype),
        dimension_numbers=(((1,), (1,)), ((), ())),
        preferred_element_type=jnp.float32,
    ) + b3_ref[...]
    out_ref[...] = jax.nn.sigmoid(logits).astype(out_ref.dtype)


@functools.partial(
    jax.jit, static_argnames=("pac", "matmul_dtype", "activation_dtype")
)
def packed_discriminator_forward(
    x, params, pac, matmul_dtype=jnp.bfloat16, activation_dtype=jnp.float32
):
    """x: [B, input_dim] with B % pac == 0. Returns [B // pac, 1] float32.

    matmul_dtype: dtype of MXU inputs (f32 accumulation always).
    activation_dtype: dtype of the LeakyReLU elementwise math; f32 is the safe
        default (native on v5e); bf16 halves VALU/vreg cost on v6e/v7x.
    """
    w1, b1, w2, b2, w3, b3 = params
    batch, input_dim = x.shape
    assert batch % pac == 0
    pac_dim = pac * input_dim
    x_packed = x.reshape(-1, pac_dim).astype(jnp.float32)  # == x.view(-1, pac_dim)
    m = x_packed.shape[0]
    h1_dim = w1.shape[1]
    h2_dim = w2.shape[1]

    tile_m = _choose_tile_m(m, pac_dim, h1_dim, h2_dim)
    num_tiles = pl.cdiv(m, tile_m)
    m_pad = num_tiles * tile_m
    if m_pad != m:
        x_packed = jnp.pad(x_packed, ((0, m_pad - m), (0, 0)))

    # Only the tiny VMEM-resident weights are pre-cast (one-time, negligible);
    # the streamed x stays f32 in HBM and is cast inside the kernel.
    w1c = w1.astype(matmul_dtype)
    w2c = w2.astype(matmul_dtype)
    w3c = w3.reshape(1, h2_dim).astype(matmul_dtype)
    b1r = b1.reshape(1, h1_dim).astype(jnp.float32)
    b2r = b2.reshape(1, h2_dim).astype(jnp.float32)
    b3r = b3.reshape(1, 1).astype(jnp.float32)

    kernel = functools.partial(
        packed_discriminator_kernel,
        matmul_dtype=matmul_dtype,
        activation_dtype=activation_dtype,
    )

    out = pl.pallas_call(
        kernel,
        # Lane-dense output: one [1, tile_m] row-slab per grid step.
        out_shape=jax.ShapeDtypeStruct((num_tiles, 1, tile_m), jnp.float32),
        grid=(num_tiles,),
        in_specs=[
            # Streamed over the row grid (auto double-buffered).
            pl.BlockSpec((tile_m, pac_dim), lambda i: (i, 0)),
            # Weights / biases: constant block index -> VMEM-resident across steps.
            pl.BlockSpec((pac_dim, h1_dim), lambda i: (0, 0)),
            pl.BlockSpec((1, h1_dim), lambda i: (0, 0)),
            pl.BlockSpec((h1_dim, h2_dim), lambda i: (0, 0)),
            pl.BlockSpec((1, h2_dim), lambda i: (0, 0)),
            pl.BlockSpec((1, h2_dim), lambda i: (0, 0)),
            pl.BlockSpec((1, 1), lambda i: (0, 0)),
        ],
        out_specs=pl.BlockSpec((None, 1, tile_m), lambda i: (i, 0, 0)),
        compiler_params=pltpu.CompilerParams(
            dimension_semantics=("parallel",),
            vmem_limit_bytes=VMEM_LIMIT_BYTES,
        ),
    )(x_packed, w1c, b1r, w2c, b2r, w3c, b3r)

    # Free layout plumbing: back to the PyTorch-shaped [M, 1] column.
    return out.reshape(-1)[:m].reshape(m, 1)


def init_params(key, input_dim=2, pac=10, architecture=(128, 128)):
    """Deterministic init mimicking PyTorch nn.Linear default (U(-1/sqrt(fan_in), +))."""
    dims = [pac * input_dim] + list(architecture) + [1]
    params = []
    for i in range(len(dims) - 1):
        fan_in, fan_out = dims[i], dims[i + 1]
        key, kw, kb = jax.random.split(key, 3)
        bound = 1.0 / (fan_in ** 0.5)
        w = jax.random.uniform(kw, (fan_in, fan_out), jnp.float32, -bound, bound)
        b = jax.random.uniform(kb, (1, fan_out), jnp.float32, -bound, bound)
        params += [w, b]
    return tuple(params)


def reference_forward(x, params, pac, negative_slope=NEG_SLOPE):
    """Pure-JAX f32 reference of the PyTorch forward (eval mode)."""
    w1, b1, w2, b2, w3, b3 = params
    h = x.reshape(-1, pac * x.shape[1])
    h = _leaky_relu(h @ w1 + b1, negative_slope)
    h = _leaky_relu(h @ w2 + b2, negative_slope)
    return jax.nn.sigmoid(h @ w3 + b3)


if __name__ == "__main__":
    input_dim = 2
    pac = 10
    architecture = (128, 128)

    key = jax.random.PRNGKey(0)
    key, kx1, kx2 = jax.random.split(key, 3)
    params = init_params(key, input_dim=input_dim, pac=pac, architecture=architecture)

    # Small batch (single tile path): packed batch = 4.
    batch_small = 40
    x_small = jax.random.normal(kx1, (batch_small, input_dim), jnp.float32)
    ref_small = reference_forward(x_small, params, pac)

    # Exact-precision path (f32 matmuls + f32 activations): tight tolerance.
    out_f32 = packed_discriminator_forward(
        x_small, params, pac, matmul_dtype=jnp.float32, activation_dtype=jnp.float32
    )
    out_f32 = jax.block_until_ready(out_f32)
    assert out_f32.shape == (batch_small // pac, 1), out_f32.shape
    assert jnp.allclose(out_f32, ref_small, atol=1e-5, rtol=1e-5), (out_f32, ref_small)

    # Default fast path (bf16 matmul inputs, f32 accumulation + activations).
    out_bf16 = packed_discriminator_forward(x_small, params, pac)
    out_bf16 = jax.block_until_ready(out_bf16)
    assert out_bf16.shape == (batch_small // pac, 1), out_bf16.shape
    assert jnp.allclose(out_bf16, ref_small, atol=3e-2, rtol=3e-2), (out_bf16, ref_small)

    # Larger batch: exercises multi-tile grid (>=2 steps for v7x), row padding,
    # and bf16 activations (v6e/v7x fast path).
    batch_big = 6000  # packed batch = 600 -> 2 tiles of 304 rows (8 padded rows)
    x_big = jax.random.normal(kx2, (batch_big, input_dim), jnp.float32)
    ref_big = reference_forward(x_big, params, pac)
    out_big = packed_discriminator_forward(
        x_big, params, pac, matmul_dtype=jnp.bfloat16, activation_dtype=jnp.bfloat16
    )
    out_big = jax.block_until_ready(out_big)
    assert out_big.shape == (batch_big // pac, 1), out_big.shape
    assert jnp.allclose(out_big, ref_big, atol=5e-2, rtol=5e-2), (out_big, ref_big)

    print("KERNEL_OK")
</pallas_src>

<mosaic_0001>
module attributes {stable_mosaic.version = 11 : i64} {
  func.func @packed_discriminator_kernel(%arg0: i32, %arg1: memref<16x20xf32, #tpu.memory_space<vmem>>, %arg2: memref<20x128xf32, #tpu.memory_space<vmem>>, %arg3: memref<1x128xf32, #tpu.memory_space<vmem>>, %arg4: memref<128x128xf32, #tpu.memory_space<vmem>>, %arg5: memref<1x128xf32, #tpu.memory_space<vmem>>, %arg6: memref<1x128xf32, #tpu.memory_space<vmem>>, %arg7: memref<1x1xf32, #tpu.memory_space<vmem>>, %arg8: memref<1x1x16xf32, #tpu.memory_space<vmem>>) attributes {dimension_semantics = [#tpu.dimension_semantics<parallel>], iteration_bounds = array<i64: 1>, scalar_prefetch = 0 : i64, scratch_operands = 0 : i64, tpu.core_type = #tpu.core_type<tc>, window_params = [{transform_indices = @transform_0, window_bounds = array<i64: 16, 20>}, {pipeline_mode = #tpu.pipeline_mode<synchronous>, transform_indices = @transform_1, window_bounds = array<i64: 20, 128>}, {pipeline_mode = #tpu.pipeline_mode<synchronous>, transform_indices = @transform_2, window_bounds = array<i64: 1, 128>}, {pipeline_mode = #tpu.pipeline_mode<synchronous>, transform_indices = @transform_3, window_bounds = array<i64: 128, 128>}, {pipeline_mode = #tpu.pipeline_mode<synchronous>, transform_indices = @transform_4, window_bounds = array<i64: 1, 128>}, {pipeline_mode = #tpu.pipeline_mode<synchronous>, transform_indices = @transform_5, window_bounds = array<i64: 1, 128>}, {pipeline_mode = #tpu.pipeline_mode<synchronous>, transform_indices = @transform_6, window_bounds = array<i64: 1, 1>}, {transform_indices = @transform_7, window_bounds = array<i64: 1, 1, 16>}]} {
    %c0 = arith.constant 0 : index
    %c0_0 = arith.constant 0 : index
    %0 = vector.load %arg1[%c0, %c0_0] : memref<16x20xf32, #tpu.memory_space<vmem>>, vector<16x20xf32>
    %c0_1 = arith.constant 0 : index
    %c0_2 = arith.constant 0 : index
    %1 = vector.load %arg2[%c0_1, %c0_2] : memref<20x128xf32, #tpu.memory_space<vmem>>, vector<20x128xf32>
    %cst = arith.constant dense<0.000000e+00> : vector<16x128xf32>
    %2 = tpu.matmul %0, %1, %cst {dimension_numbers = #tpu.dot_dimension_numbers<[1], [0], [0], [1], [0, 0, 1, 1], [], []>} : vector<16x20xf32>, vector<20x128xf32>, vector<16x128xf32> -> vector<16x128xf32>
    %c0_3 = arith.constant 0 : index
    %c0_4 = arith.constant 0 : index
    %3 = vector.load %arg3[%c0_3, %c0_4] : memref<1x128xf32, #tpu.memory_space<vmem>>, vector<1x128xf32>
    %4 = vector.broadcast %3 : vector<1x128xf32> to vector<16x128xf32>
    %5 = arith.addf %2, %4 : vector<16x128xf32>
    %cst_5 = arith.constant 0.000000e+00 : f32
    %6 = vector.broadcast %cst_5 : f32 to vector<16x128xf32>
    %7 = arith.cmpf oge, %5, %6 : vector<16x128xf32>
    %cst_6 = arith.constant 2.000000e-01 : f32
    %8 = vector.broadcast %cst_6 : f32 to vector<16x128xf32>
    %9 = arith.mulf %8, %5 : vector<16x128xf32>
    %10 = arith.select %7, %5, %9 : vector<16x128xi1>, vector<16x128xf32>
    %c0_7 = arith.constant 0 : index
    %c0_8 = arith.constant 0 : index
    %11 = vector.load %arg4[%c0_7, %c0_8] : memref<128x128xf32, #tpu.memory_space<vmem>>, vector<128x128xf32>
    %cst_9 = arith.constant dense<0.000000e+00> : vector<16x128xf32>
    %12 = tpu.matmul %10, %11, %cst_9 {dimension_numbers = #tpu.dot_dimension_numbers<[1], [0], [0], [1], [0, 0, 1, 1], [], []>} : vector<16x128xf32>, vector<128x128xf32>, vector<16x128xf32> -> vector<16x128xf32>
    %c0_10 = arith.constant 0 : index
    %c0_11 = arith.constant 0 : index
    %13 = vector.load %arg5[%c0_10, %c0_11] : memref<1x128xf32, #tpu.memory_space<vmem>>, vector<1x128xf32>
    %14 = vector.broadcast %13 : vector<1x128xf32> to vector<16x128xf32>
    %15 = arith.addf %12, %14 : vector<16x128xf32>
    %cst_12 = arith.constant 0.000000e+00 : f32
    %16 = vector.broadcast %cst_12 : f32 to vector<16x128xf32>
    %17 = arith.cmpf oge, %15, %16 : vector<16x128xf32>
    %cst_13 = arith.constant 2.000000e-01 : f32
    %18 = vector.broadcast %cst_13 : f32 to vector<16x128xf32>
    %19 = arith.mulf %18, %15 : vector<16x128xf32>
    %20 = arith.select %17, %15, %19 : vector<16x128xi1>, vector<16x128xf32>
    %c0_14 = arith.constant 0 : index
    %c0_15 = arith.constant 0 : index
    %21 = vector.load %arg6[%c0_14, %c0_15] : memref<1x128xf32, #tpu.memory_space<vmem>>, vector<1x128xf32>
    %cst_16 = arith.constant dense<0.000000e+00> : vector<1x16xf32>
    %22 = tpu.matmul %21, %20, %cst_16 {dimension_numbers = #tpu.dot_dimension_numbers<[1], [1], [0], [0], [0, 0, 1, 0], [], []>} : vector<1x128xf32>, vector<16x128xf32>, vector<1x16xf32> -> vector<1x16xf32>
    %c0_17 = arith.constant 0 : index
    %c0_18 = arith.constant 0 : index
    %23 = vector.load %arg7[%c0_17, %c0_18] : memref<1x1xf32, #tpu.memory_space<vmem>>, vector<1x1xf32>
    %24 = vector.broadcast %23 : vector<1x1xf32> to vector<1x16xf32>
    %25 = arith.addf %22, %24 : vector<1x16xf32>
    %26 = arith.negf %25 : vector<1x16xf32>
    %27 = math.exp %26 : vector<1x16xf32>
    %cst_19 = arith.constant 1.000000e+00 : f32
    %28 = vector.broadcast %cst_19 : f32 to vector<1x16xf32>
    %29 = arith.addf %28, %27 : vector<1x16xf32>
    %30 = arith.divf %28, %29 : vector<1x16xf32>
    %c0_20 = arith.constant 0 : index
    %c0_21 = arith.constant 0 : index
    %c0_22 = arith.constant 0 : index
    %31 = vector.load %arg8[%c0_20, %c0_21, %c0_22] : memref<1x1x16xf32, #tpu.memory_space<vmem>>, vector<1x1x16xf32>
    %32 = vector.shape_cast %31 : vector<1x1x16xf32> to vector<1x16xf32>
    %33 = vector.shape_cast %30 : vector<1x16xf32> to vector<1x1x16xf32>
    tpu.vector_store %arg8[%c0_20, %c0_21, %c0_22], %33 {strides = array<i32>} : memref<1x1x16xf32, #tpu.memory_space<vmem>>, vector<1x1x16xf32>,
    return
  }
  func.func @transform_0(%arg0: i32) -> (i32, i32) {
    %c0_i32 = arith.constant 0 : i32
    %c0_i32_0 = arith.constant 0 : i32
    return %arg0, %c0_i32 : i32, i32
  }
  func.func @transform_1(%arg0: i32) -> (i32, i32) {
    %c0_i32 = arith.constant 0 : i32
    %c0_i32_0 = arith.constant 0 : i32
    %c0_i32_1 = arith.constant 0 : i32
    return %c0_i32, %c0_i32_0 : i32, i32
  }
  func.func @transform_2(%arg0: i32) -> (i32, i32) {
    %c0_i32 = arith.constant 0 : i32
    %c0_i32_0 = arith.constant 0 : i32
    %c0_i32_1 = arith.constant 0 : i32
    return %c0_i32, %c0_i32_0 : i32, i32
  }
  func.func @transform_3(%arg0: i32) -> (i32, i32) {
    %c0_i32 = arith.constant 0 : i32
    %c0_i32_0 = arith.constant 0 : i32
    %c0_i32_1 = arith.constant 0 : i32
    return %c0_i32, %c0_i32_0 : i32, i32
  }
  func.func @transform_4(%arg0: i32) -> (i32, i32) {
    %c0_i32 = arith.constant 0 : i32
    %c0_i32_0 = arith.constant 0 : i32
    %c0_i32_1 = arith.constant 0 : i32
    return %c0_i32, %c0_i32_0 : i32, i32
  }
  func.func @transform_5(%arg0: i32) -> (i32, i32) {
    %c0_i32 = arith.constant 0 : i32
    %c0_i32_0 = arith.constant 0 : i32
    %c0_i32_1 = arith.constant 0 : i32
    return %c0_i32, %c0_i32_0 : i32, i32
  }
  func.func @transform_6(%arg0: i32) -> (i32, i32) {
    %c0_i32 = arith.constant 0 : i32
    %c0_i32_0 = arith.constant 0 : i32
    %c0_i32_1 = arith.constant 0 : i32
    return %c0_i32, %c0_i32_0 : i32, i32
  }
  func.func @transform_7(%arg0: i32) -> (i32, i32, i32) {
    %c0_i32 = arith.constant 0 : i32
    %c0_i32_0 = arith.constant 0 : i32
    %c0_i32_1 = arith.constant 0 : i32
    return %arg0, %c0_i32, %c0_i32_0 : i32, i32, i32
  }
}

</mosaic_0001>

<bundles_post_ra>
// kernel: packed_discriminator_forward.1
= control target key start
LH: loop header
LB: loop body
LE: loop exit
PB: predicated region body
PF: predicated region fallthrough
CT: control target
= control target key end

     0   :  { %s541_s0 = inlined_call_operand.vmem [shape: f32[16,20], index: 0, kind: input, shape index: {}]   ;;  %s542_s1 = inlined_call_operand.vmem [shape: f32[20,128], index: 1, kind: input, shape index: {}]   ;;  %s543_s2 = inlined_call_operand.vmem [shape: f32[1,128], index: 2, kind: input, shape index: {}]   ;;  %s544_s3 = inlined_call_operand.hbm [shape: f32[128,128], index: 3, kind: input, shape index: {}]   ;;  %s545_s4 = inlined_call_operand.vmem [shape: f32[1,128], index: 4, kind: input, shape index: {}]   ;;  %s546_s5 = inlined_call_operand.vmem [shape: f32[1,128], index: 5, kind: input, shape index: {}]   ;;  %s547_s6 = inlined_call_operand.<no memory space> [shape: f32[1,1], index: 6, kind: input, shape index: {}]   ;;  %s548_s7 = inlined_call_operand.vmem [shape: f32[1,1,16], index: 7, kind: output, shape index: {}]  }
   0x1   :  { %v12_v0 = vstv %s547_s6 }
   0x2   :  { %13 = vst [vmem:[#allocation2] sm:$0x1] %v12_v0 }
   0x3   :  { %14 = vsyncpa [#allocation4], 0  ;;  %s460_s26 = smov [#allocation3]  }
   0x4   :  { %s26_s27 = sshll.u32 %s460_s26, 4  ;;  %s27_s27 = int_to_ptr.vmem [resolvable:$true] %s26_s27 }
   0x5   :  { %s446_s28 = scalar_lea.vmem %s27_s27, 2048  ;;  %p451_p1 = scmp.lt.s32.totalorder %s27_s27, %s27_s27 }
   0x6   :  { %p447_p0 = scmp.ne.s32.totalorder %s27_s27, %s446_s28  ;;  %p452_p2 = scmp.lt.s32.totalorder %s446_s28, %s446_s28 }
   0x8   :  { %p453_p3 = por %p452_p2, %p451_p1 }
   0xa   :  { %p454_p4 = pnand %p453_p3, %p447_p0 }
   0xc   :  { %457 = shalt.err (!%p454_p4)
}
   0xd   :  { %s461_s29 = smov 128   ;;  %s462_s30 = smov 8  }
   0xe   :  { %32 = dma.hbm_to_vmem [thread:$0]  %s544_s3, 2048, %s27_s27, [#allocation4], %s461_s29, %s461_s29, %s462_s30  }
   0xf   :  { %458 = dma.done.wait [#allocation4], 2048  }
  0x10   :  { %459 = vsyncadd [#allocation4], 4294965248  ;;  %vm61_vm0 = vcmask 1043456   ;;  %vm54_vm1 = vcmask 162816   ;;  %v46_v1 = vld [vmem:[%s542_s1 + $0x10] sm:$0xf]  ;;  %v257_v44 = vlaneseq }
  0x11   :  { %v45_v2 = vld [vmem:[%s542_s1 + $0x8] sm:$0xff]  ;;  %376 = vmatprep.subr.msk.mxu0 %vm61_vm0, %v46_v1  ;;  %v42_v3 = vld [vmem:[%s541_s0] sm:$0xff]  ;;  %v160_v6 = vld [vmem:[#allocation3 + $0x70] sm:$0xff]  ;;  %v463_v31 = vmov 0.0   ;;  %vm464_vm4 = vmmov 0   ;;  %v465_v33 = vmov 0  }
  0x12   :  { %v161_v4 = vld [vmem:[#allocation3 + $0x78] sm:$0xff]  ;;  %377 = vmatpush3.msk.msra.mxu0 %vm61_vm0, %v46_v1  ;;  %382 = vmatprep.mubr.msk.f32.mxu0 %vm54_vm1, %v42_v3  ;;  %v43_v7 = vld [vmem:[%s541_s0 + $0x8] sm:$0xff]  ;;  %v156_v11 = vld [vmem:[#allocation3 + $0x50] sm:$0xff]  ;;  %v258_v45 = vshrl.u32 %v257_v44, 7  ;;  %vm337_vm7 = vcmask 122880  }
  0x13   :  { %v44_v5 = vld [vmem:[%s542_s1] sm:$0xff]  ;;  %378 = vmatprep.subr.mxu0 %v45_v2  ;;  %385 = vmatprep.subr.mxu1 %v161_v4  ;;  %v159_v8 = vld [vmem:[#allocation3 + $0x68] sm:$0xff]  ;;  %v152_v15 = vld [vmem:[#allocation3 + $0x30] sm:$0xff] }
  0x14   :  { %379 = vmatpush3.msra.mxu0 %v45_v2  ;;  %386 = vmatpush3.msra.mxu1 %v161_v4  ;;  %v158_v9 = vld [vmem:[#allocation3 + $0x60] sm:$0xff]  ;;  %v157_v10 = vld [vmem:[#allocation3 + $0x58] sm:$0xff]  ;;  %v155_v12 = vld [vmem:[#allocation3 + $0x48] sm:$0xff]  ;;  %v259_v46 = vsub.s32 0, %v258_v45 }
  0x15   :  { %380 = vmatprep.subr.mxu0 %v44_v5  ;;  %387 = vmatprep.subr.mxu1 %v160_v6  ;;  %v154_v13 = vld [vmem:[#allocation3 + $0x40] sm:$0xff]  ;;  %v153_v14 = vld [vmem:[#allocation3 + $0x38] sm:$0xff]  ;;  %v151_v16 = vld [vmem:[#allocation3 + $0x28] sm:$0xff] }
  0x16   :  { %381 = vmatpush3.msra.mxu0 %v44_v5  ;;  %388 = vmatpush3.msra.mxu1 %v160_v6  ;;  %v150_v17 = vld [vmem:[#allocation3 + $0x20] sm:$0xff]  ;;  %v149_v18 = vld [vmem:[#allocation3 + $0x18] sm:$0xff]  ;;  %v148_v19 = vld [vmem:[#allocation3 + $0x10] sm:$0xff] }
  0x17   :  { %383 = vmatmul.mubr.msk.f32.vlgmr.msra.gmra.mxu0 %vm54_vm1, %v43_v7  ;;  %389 = vmatprep.subr.mxu1 %v159_v8  ;;  %v147_v20 = vld [vmem:[#allocation3 + $0x8] sm:$0xff]  ;;  %v146_v21 = vld [vmem:[#allocation3] sm:$0xff]  ;;  %v344_v22 = vld [vmem:[%s543_s2] ss:$0 sm:$0xff] }
  0x18   :  { %390 = vmatpush3.msra.mxu1 %v159_v8  ;;  %420 = vmatprep.subr.mxu0 %v463_v31  ;;  %v251_v32 = vld [vmem:[#allocation2] sm:$0x1] }
  0x19   :  { %391 = vmatprep.subr.mxu1 %v158_v9  ;;  %424 = vmatprep.mubr.msk.f32.mxu0 %vm464_vm4, %v463_v31  ;;  %v348_v34 = vld [vmem:[%s545_s4] ss:$0 sm:$0xff] }
  0x1a   :  { %392 = vmatpush3.msra.mxu1 %v158_v9  ;;  %433 = vset.pattern.permute.xlu0 %v465_v33  ;;  %v250_v43 = vld [vmem:[%s546_s5] sm:$0x1] }
  0x1b   :  { %393 = vmatprep.subr.mxu1 %v157_v10  ;;  %254 = vperm.xlu0 %433, %v251_v32  }
  0x1c   :  { %394 = vmatpush3.msra.mxu1 %v157_v10 }
  0x1d   :  { %395 = vmatprep.subr.mxu1 %v156_v11 }
  0x1e   :  { %396 = vmatpush3.msra.mxu1 %v156_v11 }
  0x1f   :  { %397 = vmatprep.subr.mxu1 %v155_v12 }
  0x20   :  { %398 = vmatpush3.msra.mxu1 %v155_v12 }
  0x21   :  { %399 = vmatprep.subr.mxu1 %v154_v13 }
  0x22   :  { %400 = vmatpush3.msra.mxu1 %v154_v13 }
  0x23   :  { %401 = vmatprep.subr.mxu1 %v153_v14 }
  0x24   :  { %402 = vmatpush3.msra.mxu1 %v153_v14 }
  0x25   :  { %403 = vmatprep.subr.mxu1 %v152_v15 }
  0x26   :  { %404 = vmatpush3.msra.mxu1 %v152_v15 }
  0x27   :  { %405 = vmatprep.subr.mxu1 %v151_v16 }
  0x28   :  { %406 = vmatpush3.msra.mxu1 %v151_v16 }
  0x29   :  { %407 = vmatprep.subr.mxu1 %v150_v17 }
  0x2a   :  { %408 = vmatpush3.msra.mxu1 %v150_v17 }
  0x2b   :  { %409 = vmatprep.subr.mxu1 %v149_v18 }
  0x2c   :  { %410 = vmatpush3.msra.mxu1 %v149_v18 }
  0x2d   :  { %411 = vmatprep.subr.mxu1 %v148_v19 }
  0x2e   :  { %412 = vmatpush3.msra.mxu1 %v148_v19 }
  0x2f   :  { %413 = vmatprep.subr.mxu1 %v147_v20 }
  0x30   :  { %414 = vmatpush3.msra.mxu1 %v147_v20 }
  0x31   :  { %415 = vmatprep.subr.mxu1 %v146_v21 }
  0x32   :  { %416 = vmatpush3.msra.mxu1 %v146_v21 }
  0x96   :  { %v255_v47 = vpop.permute.xlu0 %254 }
  0x97   :  { %v260_v48 = vrot.slane %v255_v47, %v259_v46 }
  0xd7   :  { %v384_v23 = vpop.f32.mrf.mxu0 }
  0xd8   :  { %v137_v24 = vadd.f32 %v384_v23, %v344_v22 }
  0xd9   :  { %v131_v25 = vpop.f32.mrf.mxu0 }
  0xda   :  { %v132_v26 = vadd.f32 %v344_v22, %v131_v25  ;;  %v143_v27 = vmul.f32 0.2, %v137_v24  ;;  %vm141_vm3 = vcmp.ge.f32.partialorder %v137_v24, 0.0 }
  0xdc   :  { %vm140_vm2 = vcmp.ge.f32.partialorder %v132_v26, 0.0  ;;  %v142_v28 = vmul.f32 0.2, %v132_v26  ;;  %v145_v30 = vsel %vm141_vm3, %v137_v24, %v143_v27 }
  0xde   :  { %v144_v29 = vsel %vm140_vm2, %v132_v26, %v142_v28 }
  0xdf   :  { %417 = vmatprep.mubr.f32.mxu1 %v144_v29 }
  0xe0   :  { %418 = vmatmul.mubr.f32.vlgmr.msra.gmra.mxu1 %v145_v30 }
 0x1a0   :  { %v419_v35 = vpop.f32.mrf.mxu1 }
 0x1a1   :  { %v241_v36 = vadd.f32 %v419_v35, %v348_v34 }
 0x1a2   :  { %v235_v37 = vpop.f32.mrf.mxu1 }
 0x1a3   :  { %vm245_vm5 = vcmp.ge.f32.partialorder %v241_v36, 0.0  ;;  %v247_v38 = vmul.f32 0.2, %v241_v36  ;;  %v236_v39 = vadd.f32 %v348_v34, %v235_v37 }
 0x1a5   :  { %v246_v40 = vmul.f32 0.2, %v236_v39  ;;  %v249_v41 = vsel %vm245_vm5, %v241_v36, %v247_v38  ;;  %vm244_vm6 = vcmp.ge.f32.partialorder %v236_v39, 0.0 }
 0x1a6   :  { %421 = vmatpush3.xpose.msra.mxu0 %v249_v41 }
 0x1a7   :  { %422 = vmatprep.subr.mxu0 %v463_v31  ;;  %v248_v42 = vsel %vm244_vm6, %v236_v39, %v246_v40 }
 0x1aa   :  { %423 = vmatpush3.xpose.msra.mxu0 %v248_v42 }
 0x1ad   :  { %425 = vmatmul.mubr.f32.vlgmr.msra.gmra.mxu0 %v250_v43 }
 0x26d   :  { %v327_v49 = vpop.f32.mrf.mxu0 }
 0x26e   :  { %v328_v50 = vadd.f32 %v327_v49, %v260_v48 }
 0x26f   :  { %v426_v51 = vpop.f32.mrf.mxu0 }
 0x270   :  { %v349_v52 = vmul.f32 -1.442695, %v328_v50 }
 0x272   :  { %434 = vpow2.f32 %v349_v52 }
 0x27f   :  { %v435_v53 = vpop.eup %434 }
 0x280   :  { %v334_v54 = vadd.f32 1.0, %v435_v53 }
 0x282   :  { %436 = vrcp.f32 %v334_v54 }
 0x28f   :  { %v437_v55 = vpop.eup %436 }
 0x290   :  { %338 = vst.msk [vmem:[%s548_s7] sm:$0x1] %vm337_vm7, %v437_v55 }
 0x291   :  { %343 = vsyncpa [#allocation4], 1 }

</bundles_post_ra>
